<compile_context>
chip_gen: v6e
topology: v6e:2x2x1
jax: 0.10.0
libtpu: 0.0.40
codegen_flags: <defaults>
</compile_context>

<pallas_src>
import jax
import jax.numpy as jnp
from jax.experimental import pallas as pl
from jax.experimental.pallas import tpu as pltpu

_MIB = 1024 * 1024


def _concat_joint_kernel(enc_ref, decp_ref, we_ref, out_ref):
    """Grid (B, nT); both axes 'parallel' (no carried state).

    enc_ref : (1, tT, E)    encoder tile (compute dtype, e.g. bf16)
    decp_ref: (1, U, H)     dec @ Wd^T + b with bias pre-folded (elementwise dtype)
    we_ref  : (E, H)        encoder half of fc1 weight, pre-transposed (VMEM-resident)
    out_ref : (1, tT, U*H)  lane-dense tanh(fc1(cat(enc, dec))) tile
    """
    U, H = decp_ref.shape[1], decp_ref.shape[2]

    # MXU matmul with f32 accumulation; the elementwise tail runs in decp's
    # dtype (bf16 on v6e/v7x where the VPU/EUP have bf16 paths, f32 on v5e).
    enc_p = jnp.dot(enc_ref[0], we_ref[...],
                    preferred_element_type=jnp.float32)          # (tT, H) f32
    enc_p = enc_p.astype(decp_ref.dtype)
    decp = decp_ref[0]                                           # (U, H)

    # Static (trace-time) loop over the small U axis: each step is a
    # sublane-broadcast add + tanh on a (tT, H) slab, stored into the
    # [u*H, (u+1)*H) slice of the dense output block.  When H is a multiple of
    # 128 (production) every store is an unmasked, lane-aligned vst; the HBM
    # writeback DMA of the (1, tT, U*H) block is dense in all cases.
    for u in range(U):
        h_u = jnp.tanh(enc_p + decp[u][None, :])                 # (tT, H)
        out_ref[0, :, u * H:(u + 1) * H] = h_u.astype(out_ref.dtype)


def _vmem_capacity_bytes():
    """Per-core VMEM capacity; conservative 64 MiB (v7x) fallback."""
    try:
        cap = getattr(pltpu.get_tpu_info(), "vmem_capacity_bytes", None)
        if cap:
            return int(cap)
    except Exception:
        pass
    return 64 * _MIB


def _elementwise_dtype():
    """bf16 elementwise tail on chips with a bf16 VPU/EUP, else f32 (v5e & older)."""
    try:
        kind = jax.devices()[0].device_kind.lower()
    except Exception:
        return jnp.float32
    if any(tag in kind for tag in ("v6", "v7", "7x")):
        return jnp.bfloat16
    return jnp.float32


def _pick_t_tile(T, U, E, H, cd_isize, ew_isize, out_isize, budget_bytes):
    """Largest T tile whose full per-step VMEM footprint fits the budget.

    Accounts for: double-buffered output + encoder blocks (T-dependent),
    double-buffered decp + We blocks (fixed; constant-index specs still get
    two buffers), and the in-kernel temporaries (f32 enc_p, its elementwise-
    dtype copy, and one (tT, H) tanh slab).
    """
    fixed = 2 * (U * H * ew_isize + E * H * cd_isize)
    per_t = (2 * (U * H * out_isize + E * cd_isize)
             + H * (4 + 2 * ew_isize))
    avail = budget_bytes - fixed
    if avail <= 0:
        avail = budget_bytes // 2
    t_fit = max(1, avail // per_t)
    if t_fit >= T:
        return T
    # Multiple of 16 keeps bf16 encoder loads / output stores on packed
    # sublanes; partial edge tiles (T % tT != 0) are masked by Pallas, so no
    # divisor search (and no silent full-T fallback) is needed.
    return min(max(16, (t_fit // 16) * 16), T)


def concat_joint_net_forward(encoder_out, decoder_state, padding_idx, params,
                             downsample=1,
                             compute_dtype=jnp.bfloat16,
                             out_dtype=jnp.bfloat16):
    """JAX/Pallas equivalent of ConcatJointNet.forward (activation='tanh')."""
    if downsample < 1:   # matches the PyTorch module's guard
        raise ValueError("downsample should be more than 1 for concat_joint")

    # ---- glue (matches the PyTorch pre-processing) ------------------------
    enc_state = encoder_out["encoder_out"][0]                # (T, B, E) fairseq
    enc_state = enc_state[::downsample]                      # (T', B, E)
    enc_state = jnp.transpose(enc_state, (1, 0, 2))          # (B, T', E)
    # TODO(synk): fuse the strided downsample + transpose into the kernel's
    # enc DMA (index_map on the (T, B, E) layout) to save one HBM round trip.

    B, T, E = enc_state.shape
    _, U, D = decoder_state.shape

    w = params["fc1_w"]                                      # (H, E+D) nn.Linear
    b = params["fc1_b"]                                      # (H,)
    H = w.shape[0]

    ew_dtype = _elementwise_dtype()

    # Pre-split the fc1 weight: the encoder half goes to the kernel (MXU); the
    # decoder half is consumed once here by the hoisted decoder projection.
    w_t = jnp.transpose(w)                                   # (E+D, H)
    w_e = w_t[:E, :].astype(compute_dtype)                   # (E, H)
    decp = (jnp.einsum("bud,dh->buh",
                       decoder_state.astype(jnp.float32),
                       w_t[E:, :].astype(jnp.float32))
            + b.astype(jnp.float32)).astype(ew_dtype)        # (B, U, H), bias folded

    enc_in = enc_state.astype(compute_dtype)

    # ---- generation-aware T tiling / VMEM budget ---------------------------
    cd_isize = jnp.dtype(compute_dtype).itemsize
    ew_isize = jnp.dtype(ew_dtype).itemsize
    out_isize = jnp.dtype(out_dtype).itemsize
    vmem_cap = _vmem_capacity_bytes()                        # 64 MiB v7x, 128 MiB v5e/v6e
    vmem_limit = int(min(vmem_cap - 8 * _MIB, (4 * vmem_cap) // 5))
    tile_budget = vmem_limit - 6 * _MIB                      # compiler-internal headroom
    tT = _pick_t_tile(T, U, E, H, cd_isize, ew_isize, out_isize, tile_budget)
    nT = pl.cdiv(T, tT)

    cost = pl.CostEstimate(
        flops=int(2 * B * T * E * H + B * T * U * H),
        transcendentals=int(B * T * U * H),
        bytes_accessed=int(
            B * T * U * H * out_isize + B * T * E * cd_isize
            + B * U * H * ew_isize + E * H * cd_isize),
    )

    h_flat = pl.pallas_call(
        _concat_joint_kernel,
        out_shape=jax.ShapeDtypeStruct((B, T, U * H), out_dtype),
        grid_spec=pltpu.PrefetchScalarGridSpec(
            num_scalar_prefetch=0,
            grid=(B, nT),
            in_specs=[
                pl.BlockSpec((1, tT, E), lambda bb, tt: (bb, tt, 0)),   # encoder tile
                pl.BlockSpec((1, U, H), lambda bb, tt: (bb, 0, 0)),     # hoisted dec proj
                pl.BlockSpec((E, H), lambda bb, tt: (0, 0)),            # We (VMEM-resident)
            ],
            out_specs=pl.BlockSpec((1, tT, U * H), lambda bb, tt: (bb, tt, 0)),
        ),
        compiler_params=pltpu.CompilerParams(
            # No cross-tile carried state -> both axes parallel (v7x megacore).
            dimension_semantics=("parallel", "parallel"),
            vmem_limit_bytes=vmem_limit,
        ),
        cost_estimate=cost,
    )(enc_in, decp, w_e)

    # Free (row-major compatible) reshape back to the module's (B, T, U, H).
    h_joint = h_flat.reshape(B, T, U, H)

    # ---- fake_src_lengths (tiny reduction, plain JAX) ----------------------
    fake_src_tokens = encoder_out["encoder_padding_mask"][0].astype(jnp.int32)
    fake_src_lengths = (fake_src_tokens != padding_idx).sum(axis=-1)
    fake_src_lengths = jnp.ceil(
        fake_src_lengths.astype(jnp.float32) / downsample).astype(jnp.int32)

    return h_joint, fake_src_lengths


def _init_params(key, encoder_dim, decoder_dim, hid_dim):
    """Deterministic nn.Linear-style init (uniform(-1/sqrt(fan_in), 1/sqrt(fan_in)))."""
    in_features = encoder_dim + decoder_dim
    k = 1.0 / jnp.sqrt(jnp.float32(in_features))
    kw, kb = jax.random.split(key)
    w = jax.random.uniform(kw, (hid_dim, in_features), jnp.float32, -k, k)
    b = jax.random.uniform(kb, (hid_dim,), jnp.float32, -k, k)
    return {"fc1_w": w, "fc1_b": b}


def _reference_forward(encoder_out, decoder_state, padding_idx, params, downsample):
    """Pure-JAX f32 mirror of the PyTorch forward (for correctness check)."""
    enc = encoder_out["encoder_out"][0][::downsample]        # (T', B, E)
    enc = jnp.transpose(enc, (1, 0, 2))                      # (B, T', E)
    B, T, E = enc.shape
    _, U, D = decoder_state.shape
    enc_e = jnp.broadcast_to(enc[:, :, None, :], (B, T, U, E))
    dec_e = jnp.broadcast_to(decoder_state[:, None, :, :], (B, T, U, D))
    h = jnp.concatenate([enc_e, dec_e], axis=-1)             # (B, T, U, E+D)
    h = h @ params["fc1_w"].T + params["fc1_b"]
    h = jnp.tanh(h)
    toks = encoder_out["encoder_padding_mask"][0].astype(jnp.int32)
    lens = (toks != padding_idx).sum(axis=-1)
    lens = jnp.ceil(lens.astype(jnp.float32) / downsample).astype(jnp.int32)
    return h, lens


if __name__ == "__main__":
    # Small, module-consistent shapes.
    B = 2            # batch
    T_full = 16      # encoder time steps (before downsample)
    U = 8            # decoder / target length
    encoder_dim = 16
    decoder_dim = 16
    hid_dim = 32
    downsample = 2
    padding_idx = 1

    key = jax.random.PRNGKey(0)
    k_enc, k_dec, k_mask, k_par = jax.random.split(key, 4)

    # fairseq layout: encoder_out is (T, B, E); padding mask is (B, T) bool.
    enc_out = jax.random.normal(k_enc, (T_full, B, encoder_dim), jnp.float32)
    dec_state = jax.random.normal(k_dec, (B, U, decoder_dim), jnp.float32)
    pad_mask = jax.random.bernoulli(k_mask, 0.25, (B, T_full))   # True = padding

    encoder_out = {
        "encoder_out": [enc_out],
        "encoder_padding_mask": [pad_mask],
    }

    params = _init_params(k_par, encoder_dim, decoder_dim, hid_dim)

    h_joint, fake_src_lengths = concat_joint_net_forward(
        encoder_out, dec_state, padding_idx, params, downsample=downsample)
    h_joint = jax.block_until_ready(h_joint)
    fake_src_lengths = jax.block_until_ready(fake_src_lengths)

    # Correctness vs. a pure-JAX f32 mirror (bf16 IO / elementwise -> looser tol).
    h_ref, lens_ref = _reference_forward(
        encoder_out, dec_state, padding_idx, params, downsample)
    assert h_joint.shape == (B, T_full // downsample, U, hid_dim), h_joint.shape
    assert h_joint.dtype == jnp.bfloat16, h_joint.dtype
    diff = jnp.abs(h_joint.astype(jnp.float32) - h_ref)
    assert float(diff.max()) < 7.5e-2, float(diff.max())
    assert float(diff.mean()) < 1.5e-2, float(diff.mean())
    assert jnp.array_equal(fake_src_lengths, lens_ref)

    print("KERNEL_OK")
</pallas_src>

<mosaic_0001>
module attributes {stable_mosaic.version = 11 : i64} {
  func.func @_concat_joint_kernel(%arg0: i32, %arg1: i32, %arg2: memref<1x8x16xbf16, #tpu.memory_space<vmem>>, %arg3: memref<1x8x32xf32, #tpu.memory_space<vmem>>, %arg4: memref<16x32xbf16, #tpu.memory_space<vmem>>, %arg5: memref<1x8x256xbf16, #tpu.memory_space<vmem>>) attributes {dimension_semantics = [#tpu.dimension_semantics<parallel>, #tpu.dimension_semantics<parallel>], iteration_bounds = array<i64: 2, 1>, scalar_prefetch = 0 : i64, scratch_operands = 0 : i64, tpu.core_type = #tpu.core_type<tc>, window_params = [{transform_indices = @transform_0, window_bounds = array<i64: 1, 8, 16>}, {transform_indices = @transform_1, window_bounds = array<i64: 1, 8, 32>}, {pipeline_mode = #tpu.pipeline_mode<synchronous>, transform_indices = @transform_2, window_bounds = array<i64: 16, 32>}, {transform_indices = @transform_3, window_bounds = array<i64: 1, 8, 256>}]} {
    %c0 = arith.constant 0 : index
    %c0_0 = arith.constant 0 : index
    %c0_1 = arith.constant 0 : index
    %0 = vector.load %arg2[%c0, %c0_0, %c0_1] : memref<1x8x16xbf16, #tpu.memory_space<vmem>>, vector<1x8x16xbf16>
    %1 = vector.shape_cast %0 : vector<1x8x16xbf16> to vector<8x16xbf16>
    %c0_2 = arith.constant 0 : index
    %c0_3 = arith.constant 0 : index
    %2 = vector.load %arg4[%c0_2, %c0_3] : memref<16x32xbf16, #tpu.memory_space<vmem>>, vector<16x32xbf16>
    %cst = arith.constant dense<0.000000e+00> : vector<8x32xf32>
    %3 = tpu.matmul %1, %2, %cst {dimension_numbers = #tpu.dot_dimension_numbers<[1], [0], [0], [1], [0, 0, 1, 1], [], []>} : vector<8x16xbf16>, vector<16x32xbf16>, vector<8x32xf32> -> vector<8x32xf32>
    %c0_4 = arith.constant 0 : index
    %c0_5 = arith.constant 0 : index
    %c0_6 = arith.constant 0 : index
    %4 = vector.load %arg3[%c0_4, %c0_5, %c0_6] : memref<1x8x32xf32, #tpu.memory_space<vmem>>, vector<1x8x32xf32>
    %5 = vector.shape_cast %4 : vector<1x8x32xf32> to vector<8x32xf32>
    %6 = vector.extract_strided_slice %5 {offsets = [0, 0], sizes = [1, 32], strides = [1, 1]} : vector<8x32xf32> to vector<1x32xf32>
    %7 = vector.shape_cast %6 : vector<1x32xf32> to vector<32xf32>
    %8 = vector.shape_cast %7 : vector<32xf32> to vector<1x32xf32>
    %9 = vector.broadcast %8 : vector<1x32xf32> to vector<8x32xf32>
    %10 = arith.addf %3, %9 : vector<8x32xf32>
    %11 = math.tanh %10 : vector<8x32xf32>
    %12 = arith.truncf %11 : vector<8x32xf32> to vector<8x32xbf16>
    %c0_7 = arith.constant 0 : index
    %c0_8 = arith.constant 0 : index
    %c0_9 = arith.constant 0 : index
    %13 = vector.load %arg5[%c0_7, %c0_8, %c0_9] : memref<1x8x256xbf16, #tpu.memory_space<vmem>>, vector<1x8x32xbf16>
    %14 = vector.shape_cast %13 : vector<1x8x32xbf16> to vector<8x32xbf16>
    %15 = vector.shape_cast %12 : vector<8x32xbf16> to vector<1x8x32xbf16>
    tpu.vector_store %arg5[%c0_7, %c0_8, %c0_9], %15 {strides = array<i32>} : memref<1x8x256xbf16, #tpu.memory_space<vmem>>, vector<1x8x32xbf16>,
    %16 = vector.extract_strided_slice %5 {offsets = [1, 0], sizes = [1, 32], strides = [1, 1]} : vector<8x32xf32> to vector<1x32xf32>
    %17 = vector.shape_cast %16 : vector<1x32xf32> to vector<32xf32>
    %18 = vector.shape_cast %17 : vector<32xf32> to vector<1x32xf32>
    %19 = vector.broadcast %18 : vector<1x32xf32> to vector<8x32xf32>
    %20 = arith.addf %3, %19 : vector<8x32xf32>
    %21 = math.tanh %20 : vector<8x32xf32>
    %22 = arith.truncf %21 : vector<8x32xf32> to vector<8x32xbf16>
    %c0_10 = arith.constant 0 : index
    %c0_11 = arith.constant 0 : index
    %c32 = arith.constant 32 : index
    %23 = vector.load %arg5[%c0_10, %c0_11, %c32] : memref<1x8x256xbf16, #tpu.memory_space<vmem>>, vector<1x8x32xbf16>
    %24 = vector.shape_cast %23 : vector<1x8x32xbf16> to vector<8x32xbf16>
    %25 = vector.shape_cast %22 : vector<8x32xbf16> to vector<1x8x32xbf16>
    tpu.vector_store %arg5[%c0_10, %c0_11, %c32], %25 {strides = array<i32>} : memref<1x8x256xbf16, #tpu.memory_space<vmem>>, vector<1x8x32xbf16>,
    %26 = vector.extract_strided_slice %5 {offsets = [2, 0], sizes = [1, 32], strides = [1, 1]} : vector<8x32xf32> to vector<1x32xf32>
    %27 = vector.shape_cast %26 : vector<1x32xf32> to vector<32xf32>
    %28 = vector.shape_cast %27 : vector<32xf32> to vector<1x32xf32>
    %29 = vector.broadcast %28 : vector<1x32xf32> to vector<8x32xf32>
    %30 = arith.addf %3, %29 : vector<8x32xf32>
    %31 = math.tanh %30 : vector<8x32xf32>
    %32 = arith.truncf %31 : vector<8x32xf32> to vector<8x32xbf16>
    %c0_12 = arith.constant 0 : index
    %c0_13 = arith.constant 0 : index
    %c64 = arith.constant 64 : index
    %33 = vector.load %arg5[%c0_12, %c0_13, %c64] : memref<1x8x256xbf16, #tpu.memory_space<vmem>>, vector<1x8x32xbf16>
    %34 = vector.shape_cast %33 : vector<1x8x32xbf16> to vector<8x32xbf16>
    %35 = vector.shape_cast %32 : vector<8x32xbf16> to vector<1x8x32xbf16>
    tpu.vector_store %arg5[%c0_12, %c0_13, %c64], %35 {strides = array<i32>} : memref<1x8x256xbf16, #tpu.memory_space<vmem>>, vector<1x8x32xbf16>,
    %36 = vector.extract_strided_slice %5 {offsets = [3, 0], sizes = [1, 32], strides = [1, 1]} : vector<8x32xf32> to vector<1x32xf32>
    %37 = vector.shape_cast %36 : vector<1x32xf32> to vector<32xf32>
    %38 = vector.shape_cast %37 : vector<32xf32> to vector<1x32xf32>
    %39 = vector.broadcast %38 : vector<1x32xf32> to vector<8x32xf32>
    %40 = arith.addf %3, %39 : vector<8x32xf32>
    %41 = math.tanh %40 : vector<8x32xf32>
    %42 = arith.truncf %41 : vector<8x32xf32> to vector<8x32xbf16>
    %c0_14 = arith.constant 0 : index
    %c0_15 = arith.constant 0 : index
    %c96 = arith.constant 96 : index
    %43 = vector.load %arg5[%c0_14, %c0_15, %c96] : memref<1x8x256xbf16, #tpu.memory_space<vmem>>, vector<1x8x32xbf16>
    %44 = vector.shape_cast %43 : vector<1x8x32xbf16> to vector<8x32xbf16>
    %45 = vector.shape_cast %42 : vector<8x32xbf16> to vector<1x8x32xbf16>
    tpu.vector_store %arg5[%c0_14, %c0_15, %c96], %45 {strides = array<i32>} : memref<1x8x256xbf16, #tpu.memory_space<vmem>>, vector<1x8x32xbf16>,
    %46 = vector.extract_strided_slice %5 {offsets = [4, 0], sizes = [1, 32], strides = [1, 1]} : vector<8x32xf32> to vector<1x32xf32>
    %47 = vector.shape_cast %46 : vector<1x32xf32> to vector<32xf32>
    %48 = vector.shape_cast %47 : vector<32xf32> to vector<1x32xf32>
    %49 = vector.broadcast %48 : vector<1x32xf32> to vector<8x32xf32>
    %50 = arith.addf %3, %49 : vector<8x32xf32>
    %51 = math.tanh %50 : vector<8x32xf32>
    %52 = arith.truncf %51 : vector<8x32xf32> to vector<8x32xbf16>
    %c0_16 = arith.constant 0 : index
    %c0_17 = arith.constant 0 : index
    %c128 = arith.constant 128 : index
    %53 = vector.load %arg5[%c0_16, %c0_17, %c128] : memref<1x8x256xbf16, #tpu.memory_space<vmem>>, vector<1x8x32xbf16>
    %54 = vector.shape_cast %53 : vector<1x8x32xbf16> to vector<8x32xbf16>
    %55 = vector.shape_cast %52 : vector<8x32xbf16> to vector<1x8x32xbf16>
    tpu.vector_store %arg5[%c0_16, %c0_17, %c128], %55 {strides = array<i32>} : memref<1x8x256xbf16, #tpu.memory_space<vmem>>, vector<1x8x32xbf16>,
    %56 = vector.extract_strided_slice %5 {offsets = [5, 0], sizes = [1, 32], strides = [1, 1]} : vector<8x32xf32> to vector<1x32xf32>
    %57 = vector.shape_cast %56 : vector<1x32xf32> to vector<32xf32>
    %58 = vector.shape_cast %57 : vector<32xf32> to vector<1x32xf32>
    %59 = vector.broadcast %58 : vector<1x32xf32> to vector<8x32xf32>
    %60 = arith.addf %3, %59 : vector<8x32xf32>
    %61 = math.tanh %60 : vector<8x32xf32>
    %62 = arith.truncf %61 : vector<8x32xf32> to vector<8x32xbf16>
    %c0_18 = arith.constant 0 : index
    %c0_19 = arith.constant 0 : index
    %c160 = arith.constant 160 : index
    %63 = vector.load %arg5[%c0_18, %c0_19, %c160] : memref<1x8x256xbf16, #tpu.memory_space<vmem>>, vector<1x8x32xbf16>
    %64 = vector.shape_cast %63 : vector<1x8x32xbf16> to vector<8x32xbf16>
    %65 = vector.shape_cast %62 : vector<8x32xbf16> to vector<1x8x32xbf16>
    tpu.vector_store %arg5[%c0_18, %c0_19, %c160], %65 {strides = array<i32>} : memref<1x8x256xbf16, #tpu.memory_space<vmem>>, vector<1x8x32xbf16>,
    %66 = vector.extract_strided_slice %5 {offsets = [6, 0], sizes = [1, 32], strides = [1, 1]} : vector<8x32xf32> to vector<1x32xf32>
    %67 = vector.shape_cast %66 : vector<1x32xf32> to vector<32xf32>
    %68 = vector.shape_cast %67 : vector<32xf32> to vector<1x32xf32>
    %69 = vector.broadcast %68 : vector<1x32xf32> to vector<8x32xf32>
    %70 = arith.addf %3, %69 : vector<8x32xf32>
    %71 = math.tanh %70 : vector<8x32xf32>
    %72 = arith.truncf %71 : vector<8x32xf32> to vector<8x32xbf16>
    %c0_20 = arith.constant 0 : index
    %c0_21 = arith.constant 0 : index
    %c192 = arith.constant 192 : index
    %73 = vector.load %arg5[%c0_20, %c0_21, %c192] : memref<1x8x256xbf16, #tpu.memory_space<vmem>>, vector<1x8x32xbf16>
    %74 = vector.shape_cast %73 : vector<1x8x32xbf16> to vector<8x32xbf16>
    %75 = vector.shape_cast %72 : vector<8x32xbf16> to vector<1x8x32xbf16>
    tpu.vector_store %arg5[%c0_20, %c0_21, %c192], %75 {strides = array<i32>} : memref<1x8x256xbf16, #tpu.memory_space<vmem>>, vector<1x8x32xbf16>,
    %76 = vector.extract_strided_slice %5 {offsets = [7, 0], sizes = [1, 32], strides = [1, 1]} : vector<8x32xf32> to vector<1x32xf32>
    %77 = vector.shape_cast %76 : vector<1x32xf32> to vector<32xf32>
    %78 = vector.shape_cast %77 : vector<32xf32> to vector<1x32xf32>
    %79 = vector.broadcast %78 : vector<1x32xf32> to vector<8x32xf32>
    %80 = arith.addf %3, %79 : vector<8x32xf32>
    %81 = math.tanh %80 : vector<8x32xf32>
    %82 = arith.truncf %81 : vector<8x32xf32> to vector<8x32xbf16>
    %c0_22 = arith.constant 0 : index
    %c0_23 = arith.constant 0 : index
    %c224 = arith.constant 224 : index
    %83 = vector.load %arg5[%c0_22, %c0_23, %c224] : memref<1x8x256xbf16, #tpu.memory_space<vmem>>, vector<1x8x32xbf16>
    %84 = vector.shape_cast %83 : vector<1x8x32xbf16> to vector<8x32xbf16>
    %85 = vector.shape_cast %82 : vector<8x32xbf16> to vector<1x8x32xbf16>
    tpu.vector_store %arg5[%c0_22, %c0_23, %c224], %85 {strides = array<i32>} : memref<1x8x256xbf16, #tpu.memory_space<vmem>>, vector<1x8x32xbf16>,
    return
  }
  func.func @transform_0(%arg0: i32, %arg1: i32) -> (i32, i32, i32) {
    %c0_i32 = arith.constant 0 : i32
    %c0_i32_0 = arith.constant 0 : i32
    return %arg0, %arg1, %c0_i32 : i32, i32, i32
  }
  func.func @transform_1(%arg0: i32, %arg1: i32) -> (i32, i32, i32) {
    %c0_i32 = arith.constant 0 : i32
    %c0_i32_0 = arith.constant 0 : i32
    %c0_i32_1 = arith.constant 0 : i32
    return %arg0, %c0_i32, %c0_i32_0 : i32, i32, i32
  }
  func.func @transform_2(%arg0: i32, %arg1: i32) -> (i32, i32) {
    %c0_i32 = arith.constant 0 : i32
    %c0_i32_0 = arith.constant 0 : i32
    %c0_i32_1 = arith.constant 0 : i32
    return %c0_i32, %c0_i32_0 : i32, i32
  }
  func.func @transform_3(%arg0: i32, %arg1: i32) -> (i32, i32, i32) {
    %c0_i32 = arith.constant 0 : i32
    %c0_i32_0 = arith.constant 0 : i32
    return %arg0, %arg1, %c0_i32 : i32, i32, i32
  }
}

</mosaic_0001>

<bundles_post_ra>
// kernel: tpu_custom_call.1
= control target key start
LH: loop header
LB: loop body
LE: loop exit
PB: predicated region body
PF: predicated region fallthrough
CT: control target
= control target key end

     0   :  { %s1105_s0 = inlined_call_operand.hbm [shape: bf16[2,8,16], index: 0, kind: input, shape index: {}]   ;;  %s1106_s1 = inlined_call_operand.hbm [shape: f32[2,8,32], index: 1, kind: input, shape index: {}]   ;;  %s1107_s2 = inlined_call_operand.hbm [shape: bf16[16,32], index: 2, kind: input, shape index: {}]   ;;  %s1108_s3 = inlined_call_operand.hbm [shape: bf16[2,8,256], index: 3, kind: output, shape index: {}]  }
   0x1   :  { %1110 = sst [smem:[#allocation14_spill]] %s1105_s0 }
   0x2   :  { %1111 = sst [smem:[#allocation15_spill]] %s1107_s2 }
   0x3   :  { %8 = vsyncpa [#allocation3], 0 }
   0x4   :  { %10 = vsyncpa [#allocation3 + $0x1], 0 }
   0x5   :  { %11 = vsyncpa [#allocation6], 0 }
   0x6   :  { %13 = vsyncpa [#allocation6 + $0x1], 0 }
   0x7   :  { %14 = vsyncpa [#allocation4], 0 }
   0x8   :  { %16 = vsyncpa [#allocation4 + $0x1], 0  ;;  %s891_s12 = smov 0   ;;  %s893_s13 = smov 0  }
   0x9   :  { %s895_s14 = smov 0   ;;  %s897_s15 = smov 0  }
   0xa   :  { %s899_s16 = smov 0   ;;  %s901_s17 = smov 0  }
   0xb LB: > { %s922_s18 = sadd.s32 4294967295, %s858_s17   ;;  %s545_s19 = sadd.s32 4294967294, %s858_s17   ;;  %s858_s17 = sphi %s901_s17, %s22_s17   ;;  %s854_s16 = sphi %s899_s16, %s1129_s16   ;;  %s850_s15 = sphi %s897_s15, %s1128_s15   ;;  %s846_s14 = sphi %s895_s14, %s1127_s14   ;;  %s842_s13 = sphi %s893_s13, %s1126_s13   ;;  %s838_s12 = sphi %s891_s12, %s1125_s12  }
   0xc   : > { %p56_p0 = scmp.ne.s32.totalorder %s842_s13, %s838_s12  ;;  %p57_p1 = scmp.eq.s32.totalorder %s922_s18, 0 }
   0xd   : > { %p135_p3 = scmp.eq.s32.totalorder %s545_s19, 1  ;;  %p546_p5 = scmp.ge.s32.totalorder %s858_s17, 1 }
   0xe   : > { %p931_p4 = por %p57_p1, %p56_p0  ;;  %p142_p7 = scmp.lt.s32.totalorder %s858_s17, 3 }
   0xf   : > { %p936_p6 = por %p135_p3, %p56_p0  ;;  %s860_s23 = smov [#allocation7]  }
  0x10   : > { %p941_p8 = pnand %p546_p5, %p142_p7  ;;  %s154_s24 = sshll.u32 %s860_s23, 4  ;;  %s155_s24 = int_to_ptr.vmem [resolvable:$true] %s154_s24 }
  0x11   : > { %s1113_s21 = scalar_select %p936_p6, 1, 0 }
  0x12   : > { %p596_p9 = pneg %p941_p8  ;;  %p548_p10 = scmp.ge.s32.totalorder %s858_s17, 2 }
  0x13   : > { %s34_s26 = sadd.s32 1, %s854_s16  ;;  %s699_s27 = scalar_lea.vmem %s155_s24, 128 }
  0x14   : > { %p950_p11 = pnand %p596_p9, %p57_p1  ;;  %p700_p13 = scmp.ne.s32.totalorder %s155_s24, %s699_s27 }
  0x15   : > { %p707_p5 = scmp.lt.s32.totalorder %s155_s24, %s155_s24  ;;  %p708_p7 = scmp.lt.s32.totalorder %s699_s27, %s699_s27 }
  0x16   : > { %p690_p12 = pneg %p950_p11 }
  0x17   : > { %p709_p2 = por %p708_p7, %p707_p5 }
  0x18   : > { %p702_p0 = pnand %p700_p13, %p690_p12 }
  0x1a   : > { %p703_p3 = pneg %p702_p0 }
  0x1c   : > { %p710_p6 = pnand %p709_p2, %p703_p3 }
  0x1e   : > { %713 = shalt.err (!%p710_p6)
}
  0x1f   : > { %s861_s28 = smov 64   ;;  %s862_s29 = smov 4  }
  0x20   : > { %s1116_s2 = sld [smem:[#allocation15_spill]]  ;;  %p36_p2 = scmp.ge.s32.totalorder %s34_s26, 2 }
  0x21   : > { %s43_s5 = sadd.s32 1, %s846_s14  ;;  %p50_p6 = scmp.ne.s32.totalorder %s846_s14, %s842_s13 }
  0x22   : > { %p51_p9 = scmp.eq.s32.totalorder %s858_s17, 0  ;;  %s1131_s26 = smov (%p36_p2, %s34_s26), 0 }
  0x23   : > { %1117 = sst [smem:[#allocation13_spill]] %s1131_s26  ;;  %p1119_p13 = scmp.eq.s32.totalorder %s922_s18, 1 }
  0x24   : > { %p968_p12 = por %p51_p9, %p50_p6  ;;  %s38_s8 = ssub.s32 %s854_s16, %s1131_s26 }
  0x25   : > { %p974_p0 = por %p1119_p13, %p50_p6  ;;  %p41_p3 = scmp.eq.s32.totalorder %s38_s8, 0 }
  0x26   : > { %599 = dma.hbm_to_vmem [thread:$0]  (!%p950_p11), %s1116_s2, 128, %s155_s24, [#allocation6], %s861_s28, %s861_s28, %s862_s29  }
  0x27   : > { %p612_p11 = scmp.lt.s32.totalorder %s858_s17, 2  ;;  %s982_s9 = sand.u32 1, %s846_s14  }
  0x28   : > { %s549_s10 = sshll.u32 %s982_s9, 2  ;;  %s550_s19 = sshll.u32 %s854_s16, 6 }
  0x29   : > { %s986_s11 = scalar_select %p41_p3, %s846_s14, %s43_s5  }
  0x2a   : > { %s1121_s0 = sld [smem:[#allocation14_spill]]  ;;  %s172_s27 = scalar_lea.vmem [#allocation2], %s549_s10 }
  0x2b   : > { %s180_s28 = sshll.u32 %s172_s27, 4  ;;  %p994_p5 = pnand %p612_p11, %p968_p12  ;;  %s181_s28 = int_to_ptr.vmem [resolvable:$true] %s180_s28 }
  0x2c   : > { %s187_s30 = sand.u32 1, %s858_s17   ;;  %s551_s4 = sshll.u32 %s982_s9, 3 }
  0x2d   : > { %s169_s8 = scalar_lea.sflag [#allocation3], %s982_s9  ;;  %p716_p7 = pneg %p994_p5 }
  0x2e   : > { %s727_s5 = scalar_lea.vmem %s181_s28, 64  ;;  %s863_s10 = smov [#allocation2]  }
  0x2f   : > { %p728_p2 = scmp.ne.s32.totalorder %s181_s28, %s727_s5 }
  0x30   : > { %s178_s25 = scalar_lea.hbm %s1121_s0, %s550_s19  ;;  %s732_s19 = sshll.u32 %s863_s10, 4  ;;  %s733_s19 = int_to_ptr.vmem [resolvable:$false] %s732_s19 }
  0x31   : > { %p730_p6 = pnand %p728_p2, %p716_p7  ;;  %s734_s6 = scalar_lea.vmem %s733_s19, 128 }
  0x32   : > { %p735_p12 = scmp.lt.s32.totalorder %s181_s28, %s733_s19  ;;  %p736_p13 = scmp.lt.s32.totalorder %s734_s6, %s727_s5 }
  0x33   : > { %p731_p9 = pneg %p730_p6 }
  0x34   : > { %p737_p11 = por %p736_p13, %p735_p12 }
  0x36   : > { %p738_p3 = pnand %p737_p11, %p731_p9 }
  0x38   : > { %741 = shalt.err (!%p738_p3)
}
  0x39   : > { %603 = dma.hbm_to_vmem [thread:$0]  (!%p994_p5), %s178_s25, 64, %s181_s28, %s169_s8  }
  0x3a   : > { %s552_s9 = sshll.u32 %s854_s16, 7  ;;  %s191_s0 = scalar_lea.vmem [#allocation5], %s551_s4 }
  0x3b   : > { %s196_s27 = scalar_lea.hbm %s1106_s1, %s552_s9  ;;  %s198_s2 = sshll.u32 %s191_s0, 4  ;;  %s199_s2 = int_to_ptr.vmem [resolvable:$true] %s198_s2 }
  0x3c   : > { %s188_s10 = scalar_lea.sflag [#allocation6], %s187_s30  ;;  %s755_s26 = scalar_lea.vmem %s199_s2, 128 }
  0x3d   : > { %p756_p2 = scmp.ne.s32.totalorder %s199_s2, %s755_s26  ;;  %s864_s5 = smov [#allocation5]  }
  0x3e   : > { %s760_s19 = sshll.u32 %s864_s5, 4  ;;  %s761_s19 = int_to_ptr.vmem [resolvable:$false] %s760_s19 }
  0x3f   : > { %p758_p6 = pnand %p756_p2, %p716_p7  ;;  %s762_s6 = scalar_lea.vmem %s761_s19, 256 }
  0x40   : > { %p763_p12 = scmp.lt.s32.totalorder %s199_s2, %s761_s19  ;;  %p764_p13 = scmp.lt.s32.totalorder %s762_s6, %s755_s26 }
  0x41   : > { %p759_p9 = pneg %p758_p6 }
  0x42   : > { %p765_p11 = por %p764_p13, %p763_p12 }
  0x44   : > { %p766_p3 = pnand %p765_p11, %p759_p9 }
  0x46   : > { %769 = shalt.err (!%p766_p3)
}
  0x47   : > { %606 = dma.hbm_to_vmem [thread:$0]  (!%p994_p5), %s196_s27, 128, %s199_s2, %s188_s10  }
  0x48   : > { %207 = sbr.rel (%p941_p8) target bundleno = 438 (0x1b6), region = 32  ;;  %s1020_s0 = sand.u32 (!%p941_p8), 1, %s842_s13  }
  0x49   : > { %s554_s25 = sshll.u32 (!%p941_p8), %s1020_s0, 2  ;;  %s210_s28 = scalar_lea.sflag (!%p941_p8), [#allocation3], %s1020_s0 }
  0x4a   : > { %s213_s30 = scalar_lea.vmem (!%p941_p8), [#allocation2], %s554_s25 }
  0x4d   : > { %821 = dma.done.wait (%p931_p4), %s210_s28, 64  }
  0x4e   : > { %823 = vsyncadd (%p931_p4), %s210_s28, 4294967232  ;;  %s218_s2 = sand.u32 1, %s922_s18   ;;  %s555_s22 = sshll.u32 %s1020_s0, 3 }
  0x4f   : > { %s219_s26 = scalar_lea.sflag [#allocation6], %s218_s2  ;;  %s222_s29 = scalar_lea.vmem [#allocation5], %s555_s22 }
  0x50   : > { %825 = dma.done.wait (%p931_p4), %s219_s26, 128  }
  0x51   : > { %827 = vsyncadd (%p931_p4), %s219_s26, 4294967168 }
  0x52   : > { %829 = dma.done.wait (%p57_p1), [#allocation6], 128  }
  0x53   : > { %831 = vsyncadd (%p57_p1), [#allocation6], 4294967168  ;;  %v865_v0 = vmov 0.0   ;;  %vm866_vm0 = vmmov 0   ;;  %v671_v1 = vld [vmem:[#allocation7] sm:$0xff]   ;;  %vm264_vm1 = vcmask 130048   ;;  %v309_v3 = vlaneseq }
  0x54   : > { %580 = vmatprep.subr.bf16.mxu0 %v865_v0  ;;  %582 = vmatprep.mubr.msk.bf16.mxu0 %vm866_vm0, %v865_v0  ;;  %v255_v2 = vld [vmem:[%s213_s30] sm:$0xf]  ;;  %v308_v8 = vld [vmem:[%s222_s29] sm:$0xff]  ;;  %vm316_vm2 = vcmask 257024   ;;  %s1042_s18 = scalar_lea.vmem [#allocation8], %s555_s22  ;;  %s867_s20 = smov 64  }
  0x55   : > { %581 = vmatpush3.bf16.msra.mxu0 %v671_v1  ;;  %v310_v4 = vshrl.u32 %v309_v3, 7  ;;  %s868_s4 = smov 32   ;;  %s869_s8 = smov 96   ;;  %vm331_vm3 = vcmask 519424   ;;  %vm346_vm4 = vcmask 781824   ;;  %vm361_vm5 = vcmask 1044224  }
  0x56   : > { %s577_s9 = sshll.u32 %s850_s15, 7  ;;  %s430_s23 = sshll.u32 %s1042_s18, 4  ;;  %s1057_s23 = int_to_ptr.vmem [resolvable:$true] %s430_s23 }
  0x57   : > { %v311_v5 = vsub.s32 0, %v310_v4  ;;  %v365_v6 = vsub.s32 4, %v310_v4  ;;  %v335_v7 = vsub.s32 2, %v310_v4  ;;  %v320_v9 = vsub.s32 1, %v310_v4  ;;  %s1055_s10 = scalar_lea.hbm %s1108_s3, %s577_s9  ;;  %s414_s5 = scalar_lea.sflag [#allocation4], %s1020_s0 }
  0x58   : > { %583 = vmatmul.mubr.msk.bf16.vlgmr.msra.gmra.mxu0 %vm264_vm1, %v255_v2  ;;  %v387_v10 = vsub.s32 6, %v310_v4  ;;  %v373_v11 = vsub.s32 5, %v310_v4  ;;  %v401_v17 = vsub.s32 7, %v310_v4  ;;  %v350_v20 = vsub.s32 3, %v310_v4  ;;  %s770_s15 = scalar_lea.vmem %s1057_s23, 128  ;;  %s870_s19 = smov [#allocation8]  }
  0x59   : > { %v312_v12 = vrot.slane %v308_v8, %v311_v5  ;;  %v366_v13 = vrot.slane %v308_v8, %v365_v6  ;;  %v336_v14 = vrot.slane %v308_v8, %v335_v7  ;;  %v321_v15 = vrot.slane %v308_v8, %v320_v9  ;;  %p771_p1 = scmp.ne.s32.totalorder %s1057_s23, %s770_s15  ;;  %s774_s6 = sshll.u32 %s870_s19, 4  ;;  %s775_s6 = int_to_ptr.vmem [resolvable:$false] %s774_s6 }
  0x5a   : > { %v388_v16 = vrot.slane %v308_v8, %v387_v10  ;;  %v374_v19 = vrot.slane %v308_v8, %v373_v11  ;;  %v402_v27 = vrot.slane %v308_v8, %v401_v17  ;;  %v351_v30 = vrot.slane %v308_v8, %v350_v20  ;;  %s776_s25 = scalar_lea.vmem %s775_s6, 256  ;;  %p777_p5 = scmp.lt.s32.totalorder %s1057_s23, %s775_s6 }
  0x5b   : > { %p772_p4 = pnand %p771_p1, %p974_p0  ;;  %p778_p7 = scmp.lt.s32.totalorder %s776_s25, %s770_s15 }
  0x5d   : > { %p773_p8 = pneg %p772_p4  ;;  %p779_p2 = por %p778_p7, %p777_p5 }
  0x5f   : > { %p780_p6 = pnand %p779_p2, %p773_p8 }
 0x118   : > { %v302_v18 = vpop.f32.mrf.mxu0 }
 0x119   : > { %v313_v21 = vadd.f32 %v312_v12, %v302_v18  ;;  %v367_v22 = vadd.f32 %v366_v13, %v302_v18  ;;  %v337_v23 = vadd.f32 %v336_v14, %v302_v18  ;;  %v322_v25 = vadd.f32 %v321_v15, %v302_v18 }
 0x11a   : > { %v584_v24 = vpop.f32.mrf.mxu0  ;;  %v389_v26 = vadd.f32 %v388_v16, %v302_v18  ;;  %v375_v29 = vadd.f32 %v374_v19, %v302_v18  ;;  %v403_v32 = vadd.f32 %v402_v27, %v302_v18  ;;  %v352_v33 = vadd.f32 %v351_v30, %v302_v18 }
 0x11b   : > { %672 = vtanh.f32 %v313_v21 }
 0x11c   : > { %674 = vtanh.f32 %v367_v22  ;;  %v305_v28 = vpop.f32.mrf.mxu0 }
 0x11d   : > { %676 = vtanh.f32 %v337_v23 }
 0x11e   : > { %v585_v31 = vpop.f32.mrf.mxu0  ;;  %678 = vtanh.f32 %v322_v25 }
 0x11f   : > { %680 = vtanh.f32 %v389_v26 }
 0x120   : > { %682 = vtanh.f32 %v375_v29 }
 0x121   : > { %684 = vtanh.f32 %v403_v32 }
 0x122   : > { %686 = vtanh.f32 %v352_v33 }
 0x128   : > { %v673_v34 = vpop.eup %672 }
 0x129   : > { %v675_v35 = vpop.eup %674  ;;  %v315_v36 = vpack.c.bf16 %v673_v34, %v673_v34 }
 0x12a   : > { %v677_v37 = vpop.eup %676  ;;  %v369_v38 = vpack.c.bf16 %v675_v35, %v675_v35 }
 0x12b   : > { %v679_v39 = vpop.eup %678  ;;  %v572_v40 = vpack.c.bf16 %v677_v37, %v677_v37  ;;  %317 = vst.msk [vmem:[%s1042_s18] sm:$0xf] %vm316_vm2, %v315_v36 }
 0x12c   : > { %v681_v41 = vpop.eup %680  ;;  %v571_v42 = vpack.c.bf16 %v679_v39, %v679_v39  ;;  %370 = vst.msk [vmem:[%s1042_s18 + $0x4] sm:$0xf] %vm316_vm2, %v369_v38 }
 0x12d   : > { %v683_v43 = vpop.eup %682  ;;  %343 = vrot.lane.b32.xlu1 %v572_v40, %s867_s20  ;;  %v575_v44 = vpack.c.bf16 %v681_v41, %v681_v41 }
 0x12e   : > { %328 = vrot.lane.b32.xlu0 %v571_v42, %s868_s4  ;;  %v685_v45 = vpop.eup %684  ;;  %v574_v46 = vpack.c.bf16 %v683_v43, %v683_v43 }
 0x12f   : > { %v687_v47 = vpop.eup %686  ;;  %v576_v48 = vpack.c.bf16 %v685_v45, %v685_v45 }
 0x130   : > { %v573_v49 = vpack.c.bf16 %v687_v47, %v687_v47 }
 0x131   : > { %395 = vrot.lane.b32.xlu1 %v575_v44, %s867_s20 }
 0x132   : > { %381 = vrot.lane.b32.xlu0 %v574_v46, %s868_s4 }
 0x135   : > { %409 = vrot.lane.b32.xlu1 %v576_v48, %s869_s8 }
 0x136   : > { %358 = vrot.lane.b32.xlu0 %v573_v49, %s869_s8 }
 0x19f   : > { %v344_v50 = vpop.permute.xlu1 %343 }
 0x1a0   : > { %v329_v51 = vpop.permute.xlu0 %328 }
 0x1a1   : > { %332 = vst.msk [vmem:[%s1042_s18] sm:$0xf] %vm331_vm3, %v329_v51 }
 0x1a2   : > { %347 = vst.msk [vmem:[%s1042_s18] sm:$0xf] %vm346_vm4, %v344_v50 }
 0x1a3   : > { %v396_v52 = vpop.permute.xlu1 %395 }
 0x1a4   : > { %v382_v53 = vpop.permute.xlu0 %381 }
 0x1a5   : > { %384 = vst.msk [vmem:[%s1042_s18 + $0x4] sm:$0xf] %vm331_vm3, %v382_v53 }
 0x1a6   : > { %398 = vst.msk [vmem:[%s1042_s18 + $0x4] sm:$0xf] %vm346_vm4, %v396_v52 }
 0x1a7   : > { %v410_v54 = vpop.permute.xlu1 %409 }
 0x1a8   : > { %412 = vst.msk [vmem:[%s1042_s18 + $0x4] sm:$0xf] %vm361_vm5, %v410_v54  ;;  %v359_v55 = vpop.permute.xlu0 %358 }
 0x1a9   : > { %362 = vst.msk [vmem:[%s1042_s18] sm:$0xf] %vm361_vm5, %v359_v55 }
 0x1aa   : > { %783 = shalt.err (!%p780_p6)
}
 0x1ab   : > { %s784_s28 = scalar_lea.hbm %s1055_s10, 128  ;;  %s788_s2 = scalar_lea.hbm %s1108_s3, 256 }
 0x1ac   : > { %p785_p9 = scmp.ne.s32.totalorder %s1055_s10, %s784_s28  ;;  %p789_p11 = scmp.lt.s32.totalorder %s1055_s10, %s1108_s3 }
 0x1ad   : > { %p790_p3 = scmp.lt.s32.totalorder %s788_s2, %s784_s28 }
 0x1ae   : > { %p786_p12 = pnand %p785_p9, %p974_p0 }
 0x1af   : > { %p791_p1 = por %p790_p3, %p789_p11 }
 0x1b0   : > { %p787_p13 = pneg %p786_p12 }
 0x1b2   : > { %p792_p4 = pnand %p791_p1, %p787_p13 }
 0x1b4   : > { %795 = shalt.err (!%p792_p4)
}
 0x1b5   : > { %594 = dma.vmem_to_hbm [thread:$0]  (%p974_p0), %s1057_s23, 128, %s1055_s10, %s414_s5  }
 0x1b6 PF: > { %s442_s29 = sand.u32 1, %s838_s12   ;;  %p1123_p8 = scmp.ne.s32.totalorder %s1113_s21, 0 }
 0x1b7   : > { %s443_s18 = scalar_lea.sflag [#allocation4], %s442_s29 }
 0x1b8   : > { %p608_p5 = pnand %p548_p10, %p1123_p8 }
 0x1ba   : > { %p609_p7 = pneg %p608_p5 }
 0x1bc   : > { %833 = dma.done.wait (%p609_p7), %s443_s18, 128  }
 0x1bd   : > { %835 = vsyncadd (%p609_p7), %s443_s18, 4294967168  ;;  %s22_s17 = sadd.s32 1, %s858_s17   ;;  %s1124_s7 = sld [smem:[#allocation13_spill]] }
 0x1be   : > { %p19_p2 = scmp.ge.s32.totalorder %s22_s17, 4   ;;  %s1125_s12 = smov %s842_s13 }
 0x1bf   : > { %s1126_s13 = smov %s846_s14  ;;  %s1127_s14 = smov %s986_s11 }
 0x1c0   : > { %s1128_s15 = smov %s854_s16  ;;  %21 = sbr.rel (!%p19_p2) target bundleno = 11 (0xb), region = 94 }
 0x1c3   : > { %s1129_s16 = smov %s1124_s7 }
 0x1c5   :  { %448 = vsyncpa [#allocation3], 1 }
 0x1c6   :  { %450 = vsyncpa [#allocation3 + $0x1], 1 }
 0x1c7   :  { %451 = vsyncpa [#allocation6], 1 }
 0x1c8   :  { %453 = vsyncpa [#allocation6 + $0x1], 1 }
 0x1c9   :  { %454 = vsyncpa [#allocation4], 1 }
 0x1ca   :  { %456 = vsyncpa [#allocation4 + $0x1], 1 }

</bundles_post_ra>
